<compile_context>
chip_gen: v6e
topology: v6e:2x2x1
jax: 0.10.0
libtpu: 0.0.40
codegen_flags: <defaults>
</compile_context>

<pallas_src>
import math

import jax
import jax.numpy as jnp
import numpy as np
from jax.experimental import pallas as pl
from jax.experimental.pallas import tpu as pltpu

# Problem sizes (consistent with the module's forward).
B, T, E = 2, 8, 32
HEAD_SIZE = 8
NH = E // HEAD_SIZE            # 4 heads
FF_SCALE = 4
H = E * FF_SCALE               # 128
EPS = 1e-5                     # nn.LayerNorm default

N = B * T                      # 16 rows of the (B*T, E) activation slab
NSPLIT = E // HEAD_SIZE        # 4 lane-blocks of width HEAD_SIZE per slab row
RPG = T // NSPLIT              # 2 slab rows feed one (batch, head) group
CROWS = NSPLIT * N             # 64 = B*NH*T head sub-vectors
NEG_INF = -1e30

# Host-precomputed additive attention bias: 0 where (row, key) belong to the same
# (batch, head) group, -1e30 otherwise.  Row r of the regrouped (CROWS, hs) slab
# belongs to group (r % N) // RPG (== b*nh + h).
_r = np.arange(CROWS)
_same_group = ((_r[:, None] % N) // RPG) == ((_r[None, :] % N) // RPG)
ATTN_BIAS = np.where(_same_group, 0.0, NEG_INF).astype(np.float32)


# ------------------------------ fused kernel ---------------------------------
def encoder_block_kernel(x_ref, wc_ref, wl_ref, bl_ref, g1_ref, be1_ref,
                         w1_ref, b1_ref, w2_ref, b2_ref, g2_ref, be2_ref,
                         bias_ref, o_ref, c_ref):
    """Whole EncoderBlock forward on a (N, E) activation slab, fully in VMEM."""
    x = x_ref[...]                                                # (N, E)

    # ---- MultiHeadAttention.core: shared QKV projection (bias-free Linear).
    # Since V = K = Q = x, core(cat(V,K,Q)).split == (core(x),)*3.
    proj = jnp.dot(x, wc_ref[...], preferred_element_type=jnp.float32)   # (N, E)

    # ---- Raw row-major .view(B, nh, T, hs):
    #   Q[b,h,t,:] = proj2d[b*T + RPG*h + t//NSPLIT, (t%NSPLIT)*hs : (t%NSPLIT+1)*hs]
    # Regroup the slab into the 64 head sub-vectors in v-major order:
    #   c[v*N + i, :] = proj[i, v*hs:(v+1)*hs]        (v = t % NSPLIT)
    # Row r of `c` belongs to head-group (r % N) // RPG (== b*nh + h).
    for v in range(NSPLIT):
        c_ref[v * N:(v + 1) * N, :] = proj[:, v * HEAD_SIZE:(v + 1) * HEAD_SIZE]
    c = c_ref[...]                                                # (CROWS, HS)

    # ---- Scaled dot-product attention for ALL heads with one matmul pair.
    inv_scale = jnp.float32(1.0 / math.sqrt(HEAD_SIZE))           # fold into Q
    s = jax.lax.dot_general(c * inv_scale, c, (((1,), (1,)), ((), ())),
                            preferred_element_type=jnp.float32)   # (CROWS, CROWS)
    s = s + bias_ref[...]                                         # same-head mask
    s = s - jnp.max(s, axis=-1, keepdims=True)                    # stable softmax
    p = jnp.exp(s)                                                # masked -> exactly 0
    p = p * pl.reciprocal(jnp.sum(p, axis=-1, keepdims=True))
    attn = jnp.dot(p, c, preferred_element_type=jnp.float32)      # (CROWS, HS)

    # ---- MHA output Linear fused with the inverse .view(B, T, E):
    #   attn2d[:, v*hs:(v+1)*hs] == attn[v*N:(v+1)*N, :]
    #   => attn2d @ Wl = sum_v attn[v*N:(v+1)*N, :] @ Wl[v*hs:(v+1)*hs, :]
    h = bl_ref[...]                                               # (1, E), broadcasts
    for v in range(NSPLIT):
        h = h + jnp.dot(attn[v * N:(v + 1) * N, :],
                        wl_ref[v * HEAD_SIZE:(v + 1) * HEAD_SIZE, :],
                        preferred_element_type=jnp.float32)

    # ---- AddAndNorm 1: LayerNorm(mha(x) + x)
    y = h + x
    mu = jnp.mean(y, axis=-1, keepdims=True)
    d = y - mu
    var = jnp.mean(d * d, axis=-1, keepdims=True)
    y1 = d * jax.lax.rsqrt(var + EPS) * g1_ref[...] + be1_ref[...]

    # ---- FeedForward: Linear -> ReLU -> Linear
    f = jnp.dot(y1, w1_ref[...], preferred_element_type=jnp.float32) + b1_ref[...]
    f = jnp.maximum(f, 0.0)
    f = jnp.dot(f, w2_ref[...], preferred_element_type=jnp.float32) + b2_ref[...]

    # ---- AddAndNorm 2: LayerNorm(ff(y1) + y1)
    y2 = f + y1
    mu2 = jnp.mean(y2, axis=-1, keepdims=True)
    d2 = y2 - mu2
    var2 = jnp.mean(d2 * d2, axis=-1, keepdims=True)
    o_ref[...] = d2 * jax.lax.rsqrt(var2 + EPS) * g2_ref[...] + be2_ref[...]


# ------------------------------- wrapper --------------------------------------
@jax.jit
def encoder_block(x, params):
    Bx, Tx, Ex = x.shape
    x2d = x.reshape(Bx * Tx, Ex)
    out2d = pl.pallas_call(
        encoder_block_kernel,
        out_shape=jax.ShapeDtypeStruct((Bx * Tx, Ex), jnp.float32),
        scratch_shapes=[pltpu.VMEM((CROWS, HEAD_SIZE), jnp.float32)],
    )(x2d, params['wc_t'], params['wl_t'], params['bl'],
      params['g1'], params['be1'], params['w1_t'], params['b1'],
      params['w2_t'], params['b2'], params['g2'], params['be2'],
      jnp.asarray(ATTN_BIAS))
    return out2d.reshape(Bx, Tx, Ex)


# -------------------------- pure-JAX reference --------------------------------
def ref_encoder_block(x, params):
    proj = x @ params['wc_t']
    q = proj.reshape(B, NH, T, HEAD_SIZE)          # PyTorch raw .view(B, nh, T, hs)
    s = jnp.einsum('bhtd,bhsd->bhts', q, q) / jnp.float32(math.sqrt(HEAD_SIZE))
    p = jax.nn.softmax(s, axis=-1)
    o = jnp.einsum('bhts,bhsd->bhtd', p, q).reshape(B, T, E)
    h = o @ params['wl_t'] + params['bl'][0]
    y = h + x
    ln = lambda v, g, b: ((v - v.mean(-1, keepdims=True))
                          / jnp.sqrt(((v - v.mean(-1, keepdims=True)) ** 2)
                                     .mean(-1, keepdims=True) + EPS)) * g[0] + b[0]
    y1 = ln(y, params['g1'], params['be1'])
    f = jnp.maximum(y1 @ params['w1_t'] + params['b1'][0], 0.0)
    f = f @ params['w2_t'] + params['b2'][0]
    y2 = f + y1
    return ln(y2, params['g2'], params['be2'])


# ------------------------------- main -----------------------------------------
if __name__ == "__main__":
    key = jax.random.PRNGKey(0)
    ks = jax.random.split(key, 8)

    # Deterministic synthetic parameters (PyTorch weights are (out, in); we store
    # transposed (in, out) copies for the kernel).
    wc = jax.random.normal(ks[0], (E, E), jnp.float32) * 0.1     # core (no bias)
    wl = jax.random.normal(ks[1], (E, E), jnp.float32) * 0.1     # mha out proj
    bl = jax.random.normal(ks[2], (E,), jnp.float32) * 0.1
    w1 = jax.random.normal(ks[3], (H, E), jnp.float32) * 0.1     # ff linear
    b1 = jax.random.normal(ks[4], (H,), jnp.float32) * 0.1
    w2 = jax.random.normal(ks[5], (E, H), jnp.float32) * 0.1     # ff linear2
    b2 = jax.random.normal(ks[6], (E,), jnp.float32) * 0.1

    params = dict(
        wc_t=wc.T, wl_t=wl.T, bl=bl.reshape(1, E),
        g1=jnp.ones((1, E), jnp.float32), be1=jnp.zeros((1, E), jnp.float32),
        w1_t=w1.T, b1=b1.reshape(1, H),
        w2_t=w2.T, b2=b2.reshape(1, E),
        g2=jnp.ones((1, E), jnp.float32), be2=jnp.zeros((1, E), jnp.float32),
    )

    x = jax.random.normal(ks[7], (B, T, E), jnp.float32)

    out = jax.block_until_ready(encoder_block(x, params))
    ref = jax.block_until_ready(ref_encoder_block(x, params))

    np.testing.assert_allclose(np.asarray(out), np.asarray(ref),
                               rtol=1e-4, atol=1e-4)
    assert out.shape == (B, T, E) and out.dtype == jnp.float32
    print("KERNEL_OK")
</pallas_src>

<mosaic_0001>
module attributes {stable_mosaic.version = 11 : i64} {
  func.func @encoder_block_kernel(%arg0: memref<16x32xf32, #tpu.memory_space<vmem>>, %arg1: memref<32x32xf32, #tpu.memory_space<vmem>>, %arg2: memref<32x32xf32, #tpu.memory_space<vmem>>, %arg3: memref<1x32xf32, #tpu.memory_space<vmem>>, %arg4: memref<1x32xf32, #tpu.memory_space<vmem>>, %arg5: memref<1x32xf32, #tpu.memory_space<vmem>>, %arg6: memref<32x128xf32, #tpu.memory_space<vmem>>, %arg7: memref<1x128xf32, #tpu.memory_space<vmem>>, %arg8: memref<128x32xf32, #tpu.memory_space<vmem>>, %arg9: memref<1x32xf32, #tpu.memory_space<vmem>>, %arg10: memref<1x32xf32, #tpu.memory_space<vmem>>, %arg11: memref<1x32xf32, #tpu.memory_space<vmem>>, %arg12: memref<64x64xf32, #tpu.memory_space<vmem>>, %arg13: memref<16x32xf32, #tpu.memory_space<vmem>>, %arg14: memref<64x8xf32, #tpu.memory_space<vmem>>) attributes {dimension_semantics = [], scalar_prefetch = 0 : i64, scratch_operands = 1 : i64, tpu.core_type = #tpu.core_type<tc>} {
    %c0 = arith.constant 0 : index
    %c0_0 = arith.constant 0 : index
    %0 = vector.load %arg0[%c0, %c0_0] : memref<16x32xf32, #tpu.memory_space<vmem>>, vector<16x32xf32>
    %c0_1 = arith.constant 0 : index
    %c0_2 = arith.constant 0 : index
    %1 = vector.load %arg1[%c0_1, %c0_2] : memref<32x32xf32, #tpu.memory_space<vmem>>, vector<32x32xf32>
    %cst = arith.constant dense<0.000000e+00> : vector<16x32xf32>
    %2 = tpu.matmul %0, %1, %cst {dimension_numbers = #tpu.dot_dimension_numbers<[1], [0], [0], [1], [0, 0, 1, 1], [], []>} : vector<16x32xf32>, vector<32x32xf32>, vector<16x32xf32> -> vector<16x32xf32>
    %3 = vector.extract_strided_slice %2 {offsets = [0, 0], sizes = [16, 8], strides = [1, 1]} : vector<16x32xf32> to vector<16x8xf32>
    %c0_3 = arith.constant 0 : index
    %c0_4 = arith.constant 0 : index
    %4 = vector.load %arg14[%c0_3, %c0_4] : memref<64x8xf32, #tpu.memory_space<vmem>>, vector<16x8xf32>
    tpu.vector_store %arg14[%c0_3, %c0_4], %3 {strides = array<i32>} : memref<64x8xf32, #tpu.memory_space<vmem>>, vector<16x8xf32>,
    %5 = vector.extract_strided_slice %2 {offsets = [0, 8], sizes = [16, 8], strides = [1, 1]} : vector<16x32xf32> to vector<16x8xf32>
    %c16 = arith.constant 16 : index
    %c0_5 = arith.constant 0 : index
    %6 = vector.load %arg14[%c16, %c0_5] : memref<64x8xf32, #tpu.memory_space<vmem>>, vector<16x8xf32>
    tpu.vector_store %arg14[%c16, %c0_5], %5 {strides = array<i32>} : memref<64x8xf32, #tpu.memory_space<vmem>>, vector<16x8xf32>,
    %7 = vector.extract_strided_slice %2 {offsets = [0, 16], sizes = [16, 8], strides = [1, 1]} : vector<16x32xf32> to vector<16x8xf32>
    %c32 = arith.constant 32 : index
    %c0_6 = arith.constant 0 : index
    %8 = vector.load %arg14[%c32, %c0_6] : memref<64x8xf32, #tpu.memory_space<vmem>>, vector<16x8xf32>
    tpu.vector_store %arg14[%c32, %c0_6], %7 {strides = array<i32>} : memref<64x8xf32, #tpu.memory_space<vmem>>, vector<16x8xf32>,
    %9 = vector.extract_strided_slice %2 {offsets = [0, 24], sizes = [16, 8], strides = [1, 1]} : vector<16x32xf32> to vector<16x8xf32>
    %c48 = arith.constant 48 : index
    %c0_7 = arith.constant 0 : index
    %10 = vector.load %arg14[%c48, %c0_7] : memref<64x8xf32, #tpu.memory_space<vmem>>, vector<16x8xf32>
    tpu.vector_store %arg14[%c48, %c0_7], %9 {strides = array<i32>} : memref<64x8xf32, #tpu.memory_space<vmem>>, vector<16x8xf32>,
    %c0_8 = arith.constant 0 : index
    %c0_9 = arith.constant 0 : index
    %11 = vector.load %arg14[%c0_8, %c0_9] : memref<64x8xf32, #tpu.memory_space<vmem>>, vector<64x8xf32>
    %cst_10 = arith.constant 0.353553385 : f32
    %12 = vector.broadcast %cst_10 : f32 to vector<64x8xf32>
    %13 = arith.mulf %11, %12 : vector<64x8xf32>
    %cst_11 = arith.constant dense<0.000000e+00> : vector<64x64xf32>
    %14 = tpu.matmul %13, %11, %cst_11 {dimension_numbers = #tpu.dot_dimension_numbers<[1], [1], [0], [0], [0, 0, 1, 0], [], []>} : vector<64x8xf32>, vector<64x8xf32>, vector<64x64xf32> -> vector<64x64xf32>
    %c0_12 = arith.constant 0 : index
    %c0_13 = arith.constant 0 : index
    %15 = vector.load %arg12[%c0_12, %c0_13] : memref<64x64xf32, #tpu.memory_space<vmem>>, vector<64x64xf32>
    %16 = arith.addf %14, %15 : vector<64x64xf32>
    %cst_14 = arith.constant dense<0xFF800000> : vector<64xf32>
    %17 = vector.multi_reduction <maximumf>, %16, %cst_14 [1] : vector<64x64xf32> to vector<64xf32>
    %18 = vector.shape_cast %17 : vector<64xf32> to vector<64x1xf32>
    %19 = vector.broadcast %18 : vector<64x1xf32> to vector<64x64xf32>
    %20 = arith.subf %16, %19 : vector<64x64xf32>
    %21 = math.exp %20 : vector<64x64xf32>
    %cst_15 = arith.constant dense<0.000000e+00> : vector<64xf32>
    %22 = vector.multi_reduction <add>, %21, %cst_15 [1] : vector<64x64xf32> to vector<64xf32>
    %23 = vector.shape_cast %22 : vector<64xf32> to vector<64x1xf32>
    %24 = tpu.reciprocal %23 : vector<64x1xf32> -> vector<64x1xf32>
    %25 = vector.broadcast %24 : vector<64x1xf32> to vector<64x64xf32>
    %26 = arith.mulf %21, %25 : vector<64x64xf32>
    %cst_16 = arith.constant dense<0.000000e+00> : vector<64x8xf32>
    %27 = tpu.matmul %26, %11, %cst_16 {dimension_numbers = #tpu.dot_dimension_numbers<[1], [0], [0], [1], [0, 0, 1, 1], [], []>} : vector<64x64xf32>, vector<64x8xf32>, vector<64x8xf32> -> vector<64x8xf32>
    %c0_17 = arith.constant 0 : index
    %c0_18 = arith.constant 0 : index
    %28 = vector.load %arg3[%c0_17, %c0_18] : memref<1x32xf32, #tpu.memory_space<vmem>>, vector<1x32xf32>
    %29 = vector.extract_strided_slice %27 {offsets = [0, 0], sizes = [16, 8], strides = [1, 1]} : vector<64x8xf32> to vector<16x8xf32>
    %c0_19 = arith.constant 0 : index
    %c0_20 = arith.constant 0 : index
    %30 = vector.load %arg2[%c0_19, %c0_20] : memref<32x32xf32, #tpu.memory_space<vmem>>, vector<8x32xf32>
    %cst_21 = arith.constant dense<0.000000e+00> : vector<16x32xf32>
    %31 = tpu.matmul %29, %30, %cst_21 {dimension_numbers = #tpu.dot_dimension_numbers<[1], [0], [0], [1], [0, 0, 1, 1], [], []>} : vector<16x8xf32>, vector<8x32xf32>, vector<16x32xf32> -> vector<16x32xf32>
    %32 = vector.broadcast %28 : vector<1x32xf32> to vector<16x32xf32>
    %33 = arith.addf %32, %31 : vector<16x32xf32>
    %34 = vector.extract_strided_slice %27 {offsets = [16, 0], sizes = [16, 8], strides = [1, 1]} : vector<64x8xf32> to vector<16x8xf32>
    %c8 = arith.constant 8 : index
    %c0_22 = arith.constant 0 : index
    %35 = vector.load %arg2[%c8, %c0_22] : memref<32x32xf32, #tpu.memory_space<vmem>>, vector<8x32xf32>
    %cst_23 = arith.constant dense<0.000000e+00> : vector<16x32xf32>
    %36 = tpu.matmul %34, %35, %cst_23 {dimension_numbers = #tpu.dot_dimension_numbers<[1], [0], [0], [1], [0, 0, 1, 1], [], []>} : vector<16x8xf32>, vector<8x32xf32>, vector<16x32xf32> -> vector<16x32xf32>
    %37 = arith.addf %33, %36 : vector<16x32xf32>
    %38 = vector.extract_strided_slice %27 {offsets = [32, 0], sizes = [16, 8], strides = [1, 1]} : vector<64x8xf32> to vector<16x8xf32>
    %c16_24 = arith.constant 16 : index
    %c0_25 = arith.constant 0 : index
    %39 = vector.load %arg2[%c16_24, %c0_25] : memref<32x32xf32, #tpu.memory_space<vmem>>, vector<8x32xf32>
    %cst_26 = arith.constant dense<0.000000e+00> : vector<16x32xf32>
    %40 = tpu.matmul %38, %39, %cst_26 {dimension_numbers = #tpu.dot_dimension_numbers<[1], [0], [0], [1], [0, 0, 1, 1], [], []>} : vector<16x8xf32>, vector<8x32xf32>, vector<16x32xf32> -> vector<16x32xf32>
    %41 = arith.addf %37, %40 : vector<16x32xf32>
    %42 = vector.extract_strided_slice %27 {offsets = [48, 0], sizes = [16, 8], strides = [1, 1]} : vector<64x8xf32> to vector<16x8xf32>
    %c24 = arith.constant 24 : index
    %c0_27 = arith.constant 0 : index
    %43 = vector.load %arg2[%c24, %c0_27] : memref<32x32xf32, #tpu.memory_space<vmem>>, vector<8x32xf32>
    %cst_28 = arith.constant dense<0.000000e+00> : vector<16x32xf32>
    %44 = tpu.matmul %42, %43, %cst_28 {dimension_numbers = #tpu.dot_dimension_numbers<[1], [0], [0], [1], [0, 0, 1, 1], [], []>} : vector<16x8xf32>, vector<8x32xf32>, vector<16x32xf32> -> vector<16x32xf32>
    %45 = arith.addf %41, %44 : vector<16x32xf32>
    %46 = arith.addf %45, %0 : vector<16x32xf32>
    %cst_29 = arith.constant dense<0.000000e+00> : vector<16xf32>
    %47 = vector.multi_reduction <add>, %46, %cst_29 [1] : vector<16x32xf32> to vector<16xf32>
    %48 = vector.shape_cast %47 : vector<16xf32> to vector<16x1xf32>
    %cst_30 = arith.constant 3.200000e+01 : f32
    %49 = vector.broadcast %cst_30 : f32 to vector<16x1xf32>
    %50 = arith.divf %48, %49 : vector<16x1xf32>
    %51 = vector.broadcast %50 : vector<16x1xf32> to vector<16x32xf32>
    %52 = arith.subf %46, %51 : vector<16x32xf32>
    %53 = arith.mulf %52, %52 : vector<16x32xf32>
    %cst_31 = arith.constant dense<0.000000e+00> : vector<16xf32>
    %54 = vector.multi_reduction <add>, %53, %cst_31 [1] : vector<16x32xf32> to vector<16xf32>
    %55 = vector.shape_cast %54 : vector<16xf32> to vector<16x1xf32>
    %cst_32 = arith.constant 3.200000e+01 : f32
    %56 = vector.broadcast %cst_32 : f32 to vector<16x1xf32>
    %57 = arith.divf %55, %56 : vector<16x1xf32>
    %cst_33 = arith.constant 9.99999974E-6 : f32
    %58 = vector.broadcast %cst_33 : f32 to vector<16x1xf32>
    %59 = arith.addf %57, %58 : vector<16x1xf32>
    %60 = math.rsqrt %59 : vector<16x1xf32>
    %61 = vector.broadcast %60 : vector<16x1xf32> to vector<16x32xf32>
    %62 = arith.mulf %52, %61 : vector<16x32xf32>
    %c0_34 = arith.constant 0 : index
    %c0_35 = arith.constant 0 : index
    %63 = vector.load %arg4[%c0_34, %c0_35] : memref<1x32xf32, #tpu.memory_space<vmem>>, vector<1x32xf32>
    %64 = vector.broadcast %63 : vector<1x32xf32> to vector<16x32xf32>
    %65 = arith.mulf %62, %64 : vector<16x32xf32>
    %c0_36 = arith.constant 0 : index
    %c0_37 = arith.constant 0 : index
    %66 = vector.load %arg5[%c0_36, %c0_37] : memref<1x32xf32, #tpu.memory_space<vmem>>, vector<1x32xf32>
    %67 = vector.broadcast %66 : vector<1x32xf32> to vector<16x32xf32>
    %68 = arith.addf %65, %67 : vector<16x32xf32>
    %c0_38 = arith.constant 0 : index
    %c0_39 = arith.constant 0 : index
    %69 = vector.load %arg6[%c0_38, %c0_39] : memref<32x128xf32, #tpu.memory_space<vmem>>, vector<32x128xf32>
    %cst_40 = arith.constant dense<0.000000e+00> : vector<16x128xf32>
    %70 = tpu.matmul %68, %69, %cst_40 {dimension_numbers = #tpu.dot_dimension_numbers<[1], [0], [0], [1], [0, 0, 1, 1], [], []>} : vector<16x32xf32>, vector<32x128xf32>, vector<16x128xf32> -> vector<16x128xf32>
    %c0_41 = arith.constant 0 : index
    %c0_42 = arith.constant 0 : index
    %71 = vector.load %arg7[%c0_41, %c0_42] : memref<1x128xf32, #tpu.memory_space<vmem>>, vector<1x128xf32>
    %72 = vector.broadcast %71 : vector<1x128xf32> to vector<16x128xf32>
    %73 = arith.addf %70, %72 : vector<16x128xf32>
    %cst_43 = arith.constant 0.000000e+00 : f32
    %74 = vector.broadcast %cst_43 : f32 to vector<16x128xf32>
    %75 = arith.maximumf %73, %74 : vector<16x128xf32>
    %c0_44 = arith.constant 0 : index
    %c0_45 = arith.constant 0 : index
    %76 = vector.load %arg8[%c0_44, %c0_45] : memref<128x32xf32, #tpu.memory_space<vmem>>, vector<128x32xf32>
    %cst_46 = arith.constant dense<0.000000e+00> : vector<16x32xf32>
    %77 = tpu.matmul %75, %76, %cst_46 {dimension_numbers = #tpu.dot_dimension_numbers<[1], [0], [0], [1], [0, 0, 1, 1], [], []>} : vector<16x128xf32>, vector<128x32xf32>, vector<16x32xf32> -> vector<16x32xf32>
    %c0_47 = arith.constant 0 : index
    %c0_48 = arith.constant 0 : index
    %78 = vector.load %arg9[%c0_47, %c0_48] : memref<1x32xf32, #tpu.memory_space<vmem>>, vector<1x32xf32>
    %79 = vector.broadcast %78 : vector<1x32xf32> to vector<16x32xf32>
    %80 = arith.addf %77, %79 : vector<16x32xf32>
    %81 = arith.addf %80, %68 : vector<16x32xf32>
    %cst_49 = arith.constant dense<0.000000e+00> : vector<16xf32>
    %82 = vector.multi_reduction <add>, %81, %cst_49 [1] : vector<16x32xf32> to vector<16xf32>
    %83 = vector.shape_cast %82 : vector<16xf32> to vector<16x1xf32>
    %cst_50 = arith.constant 3.200000e+01 : f32
    %84 = vector.broadcast %cst_50 : f32 to vector<16x1xf32>
    %85 = arith.divf %83, %84 : vector<16x1xf32>
    %86 = vector.broadcast %85 : vector<16x1xf32> to vector<16x32xf32>
    %87 = arith.subf %81, %86 : vector<16x32xf32>
    %88 = arith.mulf %87, %87 : vector<16x32xf32>
    %cst_51 = arith.constant dense<0.000000e+00> : vector<16xf32>
    %89 = vector.multi_reduction <add>, %88, %cst_51 [1] : vector<16x32xf32> to vector<16xf32>
    %90 = vector.shape_cast %89 : vector<16xf32> to vector<16x1xf32>
    %cst_52 = arith.constant 3.200000e+01 : f32
    %91 = vector.broadcast %cst_52 : f32 to vector<16x1xf32>
    %92 = arith.divf %90, %91 : vector<16x1xf32>
    %cst_53 = arith.constant 9.99999974E-6 : f32
    %93 = vector.broadcast %cst_53 : f32 to vector<16x1xf32>
    %94 = arith.addf %92, %93 : vector<16x1xf32>
    %95 = math.rsqrt %94 : vector<16x1xf32>
    %96 = vector.broadcast %95 : vector<16x1xf32> to vector<16x32xf32>
    %97 = arith.mulf %87, %96 : vector<16x32xf32>
    %c0_54 = arith.constant 0 : index
    %c0_55 = arith.constant 0 : index
    %98 = vector.load %arg10[%c0_54, %c0_55] : memref<1x32xf32, #tpu.memory_space<vmem>>, vector<1x32xf32>
    %99 = vector.broadcast %98 : vector<1x32xf32> to vector<16x32xf32>
    %100 = arith.mulf %97, %99 : vector<16x32xf32>
    %c0_56 = arith.constant 0 : index
    %c0_57 = arith.constant 0 : index
    %101 = vector.load %arg11[%c0_56, %c0_57] : memref<1x32xf32, #tpu.memory_space<vmem>>, vector<1x32xf32>
    %102 = vector.broadcast %101 : vector<1x32xf32> to vector<16x32xf32>
    %103 = arith.addf %100, %102 : vector<16x32xf32>
    %c0_58 = arith.constant 0 : index
    %c0_59 = arith.constant 0 : index
    %104 = vector.load %arg13[%c0_58, %c0_59] : memref<16x32xf32, #tpu.memory_space<vmem>>, vector<16x32xf32>
    tpu.vector_store %arg13[%c0_58, %c0_59], %103 {strides = array<i32>} : memref<16x32xf32, #tpu.memory_space<vmem>>, vector<16x32xf32>,
    return
  }
}

</mosaic_0001>

<bundles_post_ra>
// kernel: encoder_block.1
= control target key start
LH: loop header
LB: loop body
LE: loop exit
PB: predicated region body
PF: predicated region fallthrough
CT: control target
= control target key end

     0   :  { %18 = vsyncpa [#allocation4], 0  ;;  %s1910_s0 = inlined_call_operand.hbm [shape: f32[16,32], index: 0, kind: input, shape index: {}]   ;;  %s1911_s1 = inlined_call_operand.vmem [shape: f32[32,32], index: 1, kind: input, shape index: {}]   ;;  %s1912_s2 = inlined_call_operand.vmem [shape: f32[32,32], index: 2, kind: input, shape index: {}]   ;;  %s1913_s3 = inlined_call_operand.vmem [shape: f32[1,32], index: 3, kind: input, shape index: {}]   ;;  %s1914_s4 = inlined_call_operand.vmem [shape: f32[1,32], index: 4, kind: input, shape index: {}]   ;;  %s1915_s5 = inlined_call_operand.vmem [shape: f32[1,32], index: 5, kind: input, shape index: {}]   ;;  %s1916_s6 = inlined_call_operand.vmem [shape: f32[32,128], index: 6, kind: input, shape index: {}]   ;;  %s1917_s7 = inlined_call_operand.hbm [shape: f32[1,128], index: 7, kind: input, shape index: {}]   ;;  %s1918_s8 = inlined_call_operand.vmem [shape: f32[128,32], index: 8, kind: input, shape index: {}]   ;;  %s1919_s9 = inlined_call_operand.vmem [shape: f32[1,32], index: 9, kind: input, shape index: {}]   ;;  %s1920_s10 = inlined_call_operand.vmem [shape: f32[1,32], index: 10, kind: input, shape index: {}]   ;;  %s1921_s11 = inlined_call_operand.vmem [shape: f32[1,32], index: 11, kind: input, shape index: {}]   ;;  %s1922_s12 = inlined_call_operand.vmem [shape: f32[64,64], index: 12, kind: input, shape index: {}]   ;;  %s1923_s13 = inlined_call_operand.hbm [shape: f32[16,32], index: 13, kind: output, shape index: {}]  }
   0x1   :  { %19 = vsyncpa [#allocation7], 0 }
   0x2   :  { %20 = vsyncpa [#allocation5], 0  ;;  %s1595_s25 = smov [#allocation3]  }
   0x3   :  { %s26_s26 = sshll.u32 %s1595_s25, 4  ;;  %s27_s26 = int_to_ptr.vmem [resolvable:$true] %s26_s26 }
   0x4   :  { %s1537_s27 = scalar_lea.vmem %s27_s26, 256  ;;  %p1542_p1 = scmp.lt.s32.totalorder %s27_s26, %s27_s26 }
   0x5   :  { %p1538_p0 = scmp.ne.s32.totalorder %s27_s26, %s1537_s27  ;;  %p1543_p2 = scmp.lt.s32.totalorder %s1537_s27, %s1537_s27 }
   0x7   :  { %p1544_p3 = por %p1543_p2, %p1542_p1 }
   0x9   :  { %p1545_p4 = pnand %p1544_p3, %p1538_p0 }
   0xb   :  { %1548 = shalt.err (!%p1545_p4)
}
   0xc   :  { %s1596_s28 = smov 128   ;;  %s1597_s29 = smov 8  }
   0xd   :  { %32 = dma.hbm_to_vmem [thread:$0]  %s1910_s0, 256, %s27_s26, [#allocation4], %s1596_s28, %s1596_s28, %s1597_s29  }
   0xe   :  { %s1598_s15 = smov [#allocation6]  }
   0xf   :  { %s51_s16 = sshll.u32 %s1598_s15, 4  ;;  %s52_s16 = int_to_ptr.vmem [resolvable:$true] %s51_s16 }
  0x10   :  { %s1557_s17 = scalar_lea.vmem %s52_s16, 16  ;;  %s1561_s18 = scalar_lea.vmem %s52_s16, 32 }
  0x11   :  { %p1558_p5 = scmp.ne.s32.totalorder %s52_s16, %s1557_s17  ;;  %p1562_p6 = scmp.lt.s32.totalorder %s52_s16, %s52_s16 }
  0x12   :  { %p1563_p7 = scmp.lt.s32.totalorder %s1561_s18, %s1557_s17 }
  0x14   :  { %p1564_p8 = por %p1563_p7, %p1562_p6 }
  0x16   :  { %p1565_p9 = pnand %p1564_p8, %p1558_p5 }
  0x18   :  { %1568 = shalt.err (!%p1565_p9)
}
  0x19   :  { %54 = dma.hbm_to_vmem [thread:$0]  %s1917_s7, 16, %s52_s16, [#allocation7]  }
  0x1a   :  { %1589 = dma.done.wait [#allocation4], 256  }
  0x1b   :  { %1590 = vsyncadd [#allocation4], 4294967040 }
  0x1c   :  { %1591 = dma.done.wait [#allocation7], 16  }
  0x1d   :  { %1592 = vsyncadd [#allocation7], 4294967280  ;;  %vm77_vm0 = vcmask 261120   ;;  %v76_v0 = vld [vmem:[%s1911_s1 + $0x18] sm:$0xff]  ;;  %v75_v1 = vld [vmem:[%s1911_s1 + $0x10] sm:$0xff]  ;;  %vm159_vm1 = vcmask 64512  }
  0x1e   :  { %1348 = vmatprep.subr.mxu0 %v76_v0  ;;  %v1688_v2 = vld [vmem:[#allocation3] sm:$0xff]  ;;  %v74_v3 = vld [vmem:[%s1911_s1 + $0x8] sm:$0xff]  ;;  %s1599_s27 = smov 112   ;;  %s1600_s30 = smov 104   ;;  %vm365_vm2 = vcmask 523264   ;;  %v206_v38 = vld [vmem:[%s1922_s12 + $0x10] sm:$0xff] }
  0x1f   :  { %1349 = vmatpush3.msra.mxu0 %v76_v0  ;;  %1356 = vmatprep.mubr.msk.f32.mxu0 %vm77_vm0, %v1688_v2  ;;  %v73_v4 = vld [vmem:[%s1911_s1] sm:$0xff]  ;;  %v1698_v5 = vld [vmem:[#allocation3 + $0x8] sm:$0xff]  ;;  %s1601_s1 = smov 120   ;;  %v207_v40 = vld [vmem:[%s1922_s12 + $0x18] sm:$0xff]  ;;  %s1602_s0 = smov [#allocation8]  }
  0x20   :  { %1350 = vmatprep.subr.mxu0 %v75_v1  ;;  %v205_v30 = vld [vmem:[%s1922_s12 + $0x8] sm:$0xff]  ;;  %v204_v32 = vld [vmem:[%s1922_s12] sm:$0xff]  ;;  %v210_v51 = vld [vmem:[%s1922_s12 + $0x30] sm:$0xff]  ;;  %s1218_s21 = sshll.u32 %s1602_s0, 4  ;;  %s1219_s21 = int_to_ptr.vmem [resolvable:$true] %s1218_s21 }
  0x21   :  { %1351 = vmatpush3.msra.mxu0 %v75_v1  ;;  %v208_v44 = vld [vmem:[%s1922_s12 + $0x20] sm:$0xff]  ;;  %v209_v47 = vld [vmem:[%s1922_s12 + $0x28] sm:$0xff]  ;;  %v211_v55 = vld [vmem:[%s1922_s12 + $0x38] sm:$0xff]  ;;  %s1569_s22 = scalar_lea.vmem %s1219_s21, 256  ;;  %p1574_p11 = scmp.lt.s32.totalorder %s1219_s21, %s1219_s21 }
  0x22   :  { %1352 = vmatprep.subr.mxu0 %v74_v3  ;;  %p1570_p10 = scmp.ne.s32.totalorder %s1219_s21, %s1569_s22  ;;  %p1575_p12 = scmp.lt.s32.totalorder %s1569_s22, %s1569_s22 }
  0x23   :  { %1353 = vmatpush3.msra.mxu0 %v74_v3 }
  0x24   :  { %1354 = vmatprep.subr.mxu0 %v73_v4  ;;  %p1576_p13 = por %p1575_p12, %p1574_p11 }
  0x25   :  { %1355 = vmatpush3.msra.mxu0 %v73_v4 }
  0x26   :  { %1357 = vmatmul.mubr.msk.f32.vlgmr.msra.gmra.mxu0 %vm77_vm0, %v1698_v5  ;;  %p1577_p0 = pnand %p1576_p13, %p1570_p10 }
  0xe6   :  { %v1358_v6 = vpop.f32.mrf.mxu0 }
  0xe7   :  { %161 = vst.msk [vmem:[#allocation2 + $0x8] sm:$0xff] %vm159_vm1, %v1358_v6  ;;  %174 = vrot.lane.b32.xlu1 %v1358_v6, %s1599_s27  ;;  %182 = vrot.lane.b32.xlu0 %v1358_v6, %s1600_s30 }
  0xe8   :  { %v150_v7 = vpop.f32.mrf.mxu0 }
  0xe9   :  { %160 = vst.msk [vmem:[#allocation2] sm:$0xff] %vm159_vm1, %v150_v7 }
  0xeb   :  { %172 = vrot.lane.b32.xlu1 %v150_v7, %s1599_s27  ;;  %180 = vrot.lane.b32.xlu0 %v150_v7, %s1600_s30 }
  0xee   :  { %v189_v22 = vld [vmem:[#allocation2 + $0x8] sm:$0xff] }
  0xef   :  { %164 = vrot.lane.b32.xlu1 %v150_v7, %s1601_s1  ;;  %166 = vrot.lane.b32.xlu0 %v1358_v6, %s1601_s1  ;;  %v197_v23 = vmul.f32 0.35355338, %v189_v22 }
  0xf0   :  { %v188_v8 = vld [vmem:[#allocation2] sm:$0xff] }
  0xf1   :  { %v196_v9 = vmul.f32 0.35355338, %v188_v8 }
  0xf3   :  { %1375 = vmatprep.mubr.msk.f32.mxu1 %vm159_vm1, %v196_v9 }
 0x159   :  { %v175_v10 = vpop.permute.xlu1 %174  ;;  %v183_v11 = vpop.permute.xlu0 %182 }
 0x15a   :  { %179 = vst.msk [vmem:[#allocation2 + $0x28] sm:$0xff] %vm159_vm1, %v175_v10  ;;  %187 = vst.msk [vmem:[#allocation2 + $0x38] sm:$0xff] %vm159_vm1, %v183_v11 }
 0x15d   :  { %v173_v12 = vpop.permute.xlu1 %172  ;;  %v181_v13 = vpop.permute.xlu0 %180 }
 0x15e   :  { %178 = vst.msk [vmem:[#allocation2 + $0x20] sm:$0xff] %vm159_vm1, %v173_v12  ;;  %186 = vst.msk [vmem:[#allocation2 + $0x30] sm:$0xff] %vm159_vm1, %v181_v13 }
 0x161   :  { %v165_v14 = vpop.permute.xlu1 %164  ;;  %v167_v15 = vpop.permute.xlu0 %166  ;;  %v195_v16 = vld [vmem:[#allocation2 + $0x38] sm:$0xff]  ;;  %v193_v18 = vld [vmem:[#allocation2 + $0x28] sm:$0xff] }
 0x162   :  { %170 = vst.msk [vmem:[#allocation2 + $0x10] sm:$0xff] %vm159_vm1, %v165_v14  ;;  %171 = vst.msk [vmem:[#allocation2 + $0x18] sm:$0xff] %vm159_vm1, %v167_v15  ;;  %1359 = vmatprep.subr.msk.mxu1 %vm159_vm1, %v195_v16  ;;  %1387 = vmatprep.subr.mxu0 %v195_v16  ;;  %v201_v27 = vmul.f32 0.35355338, %v193_v18  ;;  %v203_v29 = vmul.f32 0.35355338, %v195_v16 }
 0x163   :  { %1360 = vmatpush3.xpose.msk.msra.mxu1 %vm159_vm1, %v195_v16  ;;  %1388 = vmatpush3.msra.mxu0 %v195_v16 }
 0x165   :  { %v194_v17 = vld [vmem:[#allocation2 + $0x30] sm:$0xff]  ;;  %v192_v19 = vld [vmem:[#allocation2 + $0x20] sm:$0xff] }
 0x166   :  { %1361 = vmatprep.subr.msk.mxu1 %vm159_vm1, %v194_v17  ;;  %1389 = vmatprep.subr.mxu0 %v194_v17  ;;  %v200_v26 = vmul.f32 0.35355338, %v192_v19  ;;  %v202_v28 = vmul.f32 0.35355338, %v194_v17 }
 0x167   :  { %1362 = vmatpush3.xpose.msk.msra.mxu1 %vm159_vm1, %v194_v17  ;;  %1390 = vmatpush3.msra.mxu0 %v194_v17 }
 0x168   :  { %1363 = vmatprep.subr.msk.mxu1 %vm159_vm1, %v193_v18  ;;  %1391 = vmatprep.subr.mxu0 %v193_v18 }
 0x169   :  { %1392 = vmatpush3.msra.mxu0 %v193_v18  ;;  %v191_v20 = vld [vmem:[#allocation2 + $0x18] sm:$0xff]  ;;  %v190_v21 = vld [vmem:[#allocation2 + $0x10] sm:$0xff] }
 0x16a   :  { %1393 = vmatprep.subr.mxu0 %v192_v19  ;;  %v198_v24 = vmul.f32 0.35355338, %v190_v21  ;;  %v199_v25 = vmul.f32 0.35355338, %v191_v20 }
 0x16b   :  { %1364 = vmatpush3.xpose.msk.msra.mxu1 %vm159_vm1, %v193_v18  ;;  %1394 = vmatpush3.msra.mxu0 %v192_v19 }
 0x16c   :  { %1365 = vmatprep.subr.msk.mxu1 %vm159_vm1, %v192_v19  ;;  %1395 = vmatprep.subr.mxu0 %v191_v20 }
 0x16d   :  { %1396 = vmatpush3.msra.mxu0 %v191_v20 }
 0x16e   :  { %1397 = vmatprep.subr.mxu0 %v190_v21 }
 0x16f   :  { %1366 = vmatpush3.xpose.msk.msra.mxu1 %vm159_vm1, %v192_v19  ;;  %1398 = vmatpush3.msra.mxu0 %v190_v21 }
 0x170   :  { %1367 = vmatprep.subr.msk.mxu1 %vm159_vm1, %v191_v20  ;;  %1399 = vmatprep.subr.mxu0 %v189_v22 }
 0x171   :  { %1400 = vmatpush3.msra.mxu0 %v189_v22 }
 0x172   :  { %1401 = vmatprep.subr.mxu0 %v188_v8 }
 0x173   :  { %1368 = vmatpush3.xpose.msk.msra.mxu1 %vm159_vm1, %v191_v20  ;;  %1402 = vmatpush3.msra.mxu0 %v188_v8 }
 0x174   :  { %1369 = vmatprep.subr.msk.mxu1 %vm159_vm1, %v190_v21 }
 0x177   :  { %1370 = vmatpush3.xpose.msk.msra.mxu1 %vm159_vm1, %v190_v21 }
 0x178   :  { %1371 = vmatprep.subr.msk.mxu1 %vm159_vm1, %v189_v22 }
 0x17b   :  { %1372 = vmatpush3.xpose.msk.msra.mxu1 %vm159_vm1, %v189_v22 }
 0x17c   :  { %1373 = vmatprep.subr.msk.mxu1 %vm159_vm1, %v188_v8 }
 0x17f   :  { %1374 = vmatpush3.xpose.msk.msra.mxu1 %vm159_vm1, %v188_v8 }
 0x182   :  { %1376 = vmatmul.mubr.msk.f32.vlgmr.msra.gmra.mxu1 %vm159_vm1, %v197_v23 }
 0x183   :  { %1378 = vmatprep.mubr.msk.f32.mxu1 %vm159_vm1, %v198_v24 }
 0x186   :  { %1379 = vmatmul.mubr.msk.f32.gmra.mxu1 %vm159_vm1, %v199_v25 }
 0x187   :  { %1381 = vmatprep.mubr.msk.f32.mxu1 %vm159_vm1, %v200_v26 }
 0x18a   :  { %1382 = vmatmul.mubr.msk.f32.gmra.mxu1 %vm159_vm1, %v201_v27 }
 0x18b   :  { %1384 = vmatprep.mubr.msk.f32.mxu1 %vm159_vm1, %v202_v28 }
 0x18e   :  { %1385 = vmatmul.mubr.msk.f32.gmra.mxu1 %vm159_vm1, %v203_v29 }
 0x242   :  { %v1377_v31 = vpop.f32.mrf.mxu1 }
 0x243   :  { %v332_v33 = vadd.f32 %v1377_v31, %v205_v30 }
 0x244   :  { %v326_v34 = vpop.f32.mrf.mxu1 }
 0x245   :  { %v327_v35 = vadd.f32 %v326_v34, %v204_v32  ;;  %v369_v36 = vsel %vm365_vm2, %v332_v33, -inf }
 0x246   :  { %370 = vmax.xlane.f32.xlu1 %v369_v36  ;;  %v1380_v37 = vpop.f32.mrf.mxu1 }
 0x247   :  { %v366_v39 = vsel %vm365_vm2, %v327_v35, -inf  ;;  %v342_v45 = vadd.f32 %v1380_v37, %v207_v40  ;;  %v584_v40 = vld [vmem:[%s1912_s2] sm:$0xff] }
 0x248   :  { %v336_v41 = vpop.f32.mrf.mxu1  ;;  %367 = vmax.xlane.f32.xlu0 %v366_v39  ;;  %1415 = vmatprep.subr.mxu0 %v584_v40 }
 0x249   :  { %v337_v42 = vadd.f32 %v336_v41, %v206_v38  ;;  %v375_v54 = vsel %vm365_vm2, %v342_v45, -inf }
 0x24a   :  { %v1383_v43 = vpop.f32.mrf.mxu1 }
 0x24b   :  { %v372_v46 = vsel %vm365_vm2, %v337_v42, -inf  ;;  %v352_v52 = vadd.f32 %v1383_v43, %v209_v47 }
 0x24c   :  { %v346_v48 = vpop.f32.mrf.mxu1  ;;  %373 = vmax.xlane.f32.xlu0 %v372_v46 }
 0x24d   :  { %v347_v49 = vadd.f32 %v346_v48, %v208_v44  ;;  %v381_v60 = vsel %vm365_vm2, %v352_v52, -inf }
 0x24e   :  { %v1386_v50 = vpop.f32.mrf.mxu1 }
 0x24f   :  { %v378_v53 = vsel %vm365_vm2, %v347_v49, -inf  ;;  %v362_v58 = vadd.f32 %v1386_v50, %v211_v55 }
 0x250   :  { %v356_v56 = vpop.f32.mrf.mxu1  ;;  %379 = vmax.xlane.f32.xlu1 %v378_v53  ;;  %376 = vmax.xlane.f32.xlu0 %v375_v54 }
 0x251   :  { %v357_v57 = vadd.f32 %v356_v56, %v210_v51  ;;  %v387_v61 = vsel %vm365_vm2, %v362_v58, -inf }
 0x253   :  { %v384_v59 = vsel %vm365_vm2, %v357_v57, -inf }
 0x254   :  { %385 = vmax.xlane.f32.xlu1 %v384_v59  ;;  %382 = vmax.xlane.f32.xlu0 %v381_v60 }
 0x258   :  { %388 = vmax.xlane.f32.xlu0 %v387_v61 }
 0x2cf   :  { %v371_v62 = vpop.xlane.xlu1 %370 }
 0x2d0   :  { %v391_v63 = vsub.f32 %v332_v33, %v371_v62 }
 0x2d1   :  { %v368_v0 = vpop.xlane.xlu0 %367 }
 0x2d2   :  { %v400_v1 = vmul.f32 1.442695, %v391_v63  ;;  %v390_v3 = vsub.f32 %v327_v35, %v368_v0 }
 0x2d4   :  { %1489 = vpow2.f32 %v400_v1  ;;  %v398_v4 = vmul.f32 1.442695, %v390_v3  ;;  %v674_v1 = vld [vmem:[%s1912_s2 + $0x8] sm:$0xff] }
 0x2d5   :  { %v374_v6 = vpop.xlane.xlu0 %373 }
 0x2d6   :  { %1491 = vpow2.f32 %v398_v4  ;;  %v392_v7 = vsub.f32 %v337_v42, %v374_v6  ;;  %v758_v6 = vld [vmem:[%s1912_s2 + $0x10] sm:$0xff] }
 0x2d8   :  { %v402_v8 = vmul.f32 1.442695, %v392_v7 }
 0x2d9   :  { %v380_v9 = vpop.xlane.xlu1 %379  ;;  %v377_v10 = vpop.xlane.xlu0 %376 }
 0x2da   :  { %1493 = vpow2.f32 %v402_v8  ;;  %v394_v11 = vsub.f32 %v347_v49, %v380_v9  ;;  %v393_v12 = vsub.f32 %v342_v45, %v377_v10  ;;  %v842_v9 = vld [vmem:[%s1912_s2 + $0x18] sm:$0xff] }
 0x2dc   :  { %v406_v13 = vmul.f32 1.442695, %v394_v11  ;;  %v404_v14 = vmul.f32 1.442695, %v393_v12 }
 0x2dd   :  { %v386_v15 = vpop.xlane.xlu1 %385  ;;  %v383_v16 = vpop.xlane.xlu0 %382 }
 0x2de   :  { %1495 = vpow2.f32 %v406_v13  ;;  %v396_v17 = vsub.f32 %v357_v57, %v386_v15  ;;  %v395_v18 = vsub.f32 %v352_v52, %v383_v16  ;;  %v1259_v16 = vld [vmem:[%s1913_s3] ss:$0 sm:$0xff] }
 0x2df   :  { %1497 = vpow2.f32 %v404_v14 }
 0x2e0   :  { %v410_v19 = vmul.f32 1.442695, %v396_v17  ;;  %v408_v20 = vmul.f32 1.442695, %v395_v18 }
 0x2e1   :  { %v1490_v21 = vpop.eup %1489  ;;  %v389_v22 = vpop.xlane.xlu0 %388 }
 0x2e2   :  { %1499 = vpow2.f32 %v410_v19  ;;  %v397_v23 = vsub.f32 %v362_v58, %v389_v22  ;;  %v417_v24 = vsel %vm365_vm2, %v1490_v21, 0.0 }
 0x2e3   :  { %v1492_v25 = vpop.eup %1491  ;;  %1501 = vpow2.f32 %v408_v20  ;;  %418 = vadd.xlane.f32.xlu0 %v417_v24 }
 0x2e4   :  { %v412_v26 = vmul.f32 1.442695, %v397_v23  ;;  %v414_v27 = vsel %vm365_vm2, %v1492_v25, 0.0 }
 0x2e5   :  { %415 = vadd.xlane.f32.xlu1 %v414_v27 }
 0x2e6   :  { %1503 = vpow2.f32 %v412_v26 }
 0x2e7   :  { %v1494_v28 = vpop.eup %1493 }
 0x2e8   :  { %v420_v29 = vsel %vm365_vm2, %v1494_v28, 0.0 }
 0x2e9   :  { %421 = vadd.xlane.f32.xlu1 %v420_v29 }
 0x2eb   :  { %v1496_v30 = vpop.eup %1495 }
 0x2ec   :  { %v1498_v31 = vpop.eup %1497  ;;  %v426_v32 = vsel %vm365_vm2, %v1496_v30, 0.0 }
 0x2ed   :  { %427 = vadd.xlane.f32.xlu1 %v426_v32  ;;  %v423_v33 = vsel %vm365_vm2, %v1498_v31, 0.0 }
 0x2ee   :  { %424 = vadd.xlane.f32.xlu0 %v423_v33 }
 0x2ef   :  { %v1500_v34 = vpop.eup %1499 }
 0x2f0   :  { %v1502_v35 = vpop.eup %1501  ;;  %v432_v36 = vsel %vm365_vm2, %v1500_v34, 0.0 }
 0x2f1   :  { %433 = vadd.xlane.f32.xlu1 %v432_v36  ;;  %v429_v37 = vsel %vm365_vm2, %v1502_v35, 0.0 }
 0x2f2   :  { %430 = vadd.xlane.f32.xlu0 %v429_v37 }
 0x2f3   :  { %v1504_v38 = vpop.eup %1503 }
 0x2f4   :  { %v435_v39 = vsel %vm365_vm2, %v1504_v38, 0.0 }
 0x2f6   :  { %436 = vadd.xlane.f32.xlu0 %v435_v39 }
 0x36c   :  { %v419_v41 = vpop.xlane.xlu0 %418 }
 0x36d   :  { %1505 = vrcp.f32 %v419_v41 }
 0x36e   :  { %v416_v42 = vpop.xlane.xlu1 %415 }
 0x36f   :  { %1507 = vrcp.f32 %v416_v42 }
 0x372   :  { %v422_v43 = vpop.xlane.xlu1 %421 }
 0x373   :  { %1509 = vrcp.f32 %v422_v43  ;;  %v976_v43 = vld [vmem:[%s1916_s6 + $0x18] sm:$0xff] }
 0x376   :  { %v428_v44 = vpop.xlane.xlu1 %427 }
 0x377   :  { %1511 = vrcp.f32 %v428_v44  ;;  %v425_v45 = vpop.xlane.xlu0 %424  ;;  %v975_v44 = vld [vmem:[%s1916_s6 + $0x10] sm:$0xff] }
 0x378   :  { %1513 = vrcp.f32 %v425_v45  ;;  %v974_v45 = vld [vmem:[%s1916_s6 + $0x8] sm:$0xff] }
 0x37a   :  { %v434_v46 = vpop.xlane.xlu1 %433  ;;  %v1506_v47 = vpop.eup %1505 }
 0x37b   :  { %1515 = vrcp.f32 %v434_v46  ;;  %v431_v48 = vpop.xlane.xlu0 %430  ;;  %v447_v51 = vmul.f32 %v1506_v47, %v1490_v21  ;;  %v973_v46 = vld [vmem:[%s1916_s6] sm:$0xff]  ;;  %v1082_v47 = vld [vmem:[%s1918_s8 + $0x78] sm:$0xff] }
 0x37c   :  { %v1508_v49 = vpop.eup %1507  ;;  %1517 = vrcp.f32 %v431_v48  ;;  %v1081_v48 = vld [vmem:[%s1918_s8 + $0x70] sm:$0xff]  ;;  %1446 = vmatprep.subr.mxu1 %v1082_v47 }
 0x37d   :  { %v446_v50 = vmul.f32 %v1508_v49, %v1492_v25  ;;  %1447 = vmatpush3.msra.mxu1 %v1082_v47  ;;  %v1080_v49 = vld [vmem:[%s1918_s8 + $0x68] sm:$0xff] }
 0x37e   :  { %1448 = vmatprep.subr.mxu1 %v1081_v48 }
 0x37f   :  { %v437_v52 = vpop.xlane.xlu0 %436  ;;  %1403 = vmatprep.mubr.msk.f32.mxu0 %vm365_vm2, %v446_v50  ;;  %1449 = vmatpush3.msra.mxu1 %v1081_v48  ;;  %v1079_v50 = vld [vmem:[%s1918_s8 + $0x60] sm:$0xff] }
 0x380   :  { %v1510_v53 = vpop.eup %1509  ;;  %1519 = vrcp.f32 %v437_v52  ;;  %1404 = vmatmul.mubr.msk.f32.vlgmr.msra.gmra.mxu0 %vm365_vm2, %v447_v51  ;;  %1450 = vmatprep.subr.mxu1 %v1080_v49  ;;  %v1078_v51 = vld [vmem:[%s1918_s8 + $0x58] sm:$0xff]  ;;  %v1077_v52 = vld [vmem:[%s1918_s8 + $0x50] sm:$0xff]  ;;  %v1272_v48 = vld [vmem:[%s1920_s10] ss:$0 sm:$0xff] }
 0x381   :  { %v448_v54 = vmul.f32 %v1510_v53, %v1494_v28  ;;  %1416 = vmatpush3.msra.mxu0 %v584_v40  ;;  %1451 = vmatpush3.msra.mxu1 %v1080_v49  ;;  %v1076_v53 = vld [vmem:[%s1918_s8 + $0x48] sm:$0xff] }
 0x382   :  { %1420 = vmatprep.subr.mxu0 %v674_v1  ;;  %1452 = vmatprep.subr.mxu1 %v1079_v50 }
 0x383   :  { %1406 = vmatprep.mubr.msk.f32.mxu0 %vm365_vm2, %v448_v54  ;;  %1453 = vmatpush3.msra.mxu1 %v1079_v50  ;;  %v1075_v54 = vld [vmem:[%s1918_s8 + $0x40] sm:$0xff] }
 0x384   :  { %v1512_v55 = vpop.eup %1511  ;;  %1454 = vmatprep.subr.mxu1 %v1078_v51 }
 0x385   :  { %v1514_v56 = vpop.eup %1513  ;;  %v450_v57 = vmul.f32 %v1512_v55, %v1496_v30  ;;  %1455 = vmatpush3.msra.mxu1 %v1078_v51  ;;  %v1074_v55 = vld [vmem:[%s1918_s8 + $0x38] sm:$0xff]  ;;  %v1273_v51 = vld [vmem:[%s1921_s11] ss:$0 sm:$0xff] }
 0x386   :  { %v449_v58 = vmul.f32 %v1514_v56, %v1498_v31  ;;  %1456 = vmatprep.subr.mxu1 %v1077_v52  ;;  %v1073_v56 = vld [vmem:[%s1918_s8 + $0x30] sm:$0xff] }
 0x387   :  { %1457 = vmatpush3.msra.mxu1 %v1077_v52 }
 0x388   :  { %v1516_v59 = vpop.eup %1515  ;;  %1407 = vmatmul.mubr.msk.f32.gmra.mxu0 %vm365_vm2, %v449_v58  ;;  %1458 = vmatprep.subr.mxu1 %v1076_v53  ;;  %v1071_v58 = vld [vmem:[%s1918_s8 + $0x20] sm:$0xff] }
 0x389   :  { %v1518_v60 = vpop.eup %1517  ;;  %1409 = vmatprep.mubr.msk.f32.mxu0 %vm365_vm2, %v450_v57  ;;  %v452_v61 = vmul.f32 %v1516_v59, %v1500_v34  ;;  %1459 = vmatpush3.msra.mxu1 %v1076_v53  ;;  %v1072_v57 = vld [vmem:[%s1918_s8 + $0x28] sm:$0xff] }
 0x38a   :  { %v451_v62 = vmul.f32 %v1518_v60, %v1502_v35  ;;  %1460 = vmatprep.subr.mxu1 %v1075_v54 }
 0x38b   :  { %1461 = vmatpush3.msra.mxu1 %v1075_v54 }
 0x38c   :  { %1410 = vmatmul.mubr.msk.f32.gmra.mxu0 %vm365_vm2, %v451_v62  ;;  %1462 = vmatprep.subr.mxu1 %v1074_v55 }
 0x38d   :  { %v1520_v63 = vpop.eup %1519  ;;  %1412 = vmatprep.mubr.msk.f32.mxu0 %vm365_vm2, %v452_v61  ;;  %1463 = vmatpush3.msra.mxu1 %v1074_v55 }
 0x38e   :  { %v453_v0 = vmul.f32 %v1520_v63, %v1504_v38  ;;  %1464 = vmatprep.subr.mxu1 %v1073_v56 }
 0x38f   :  { %1465 = vmatpush3.msra.mxu1 %v1073_v56 }
 0x390   :  { %1413 = vmatmul.mubr.msk.f32.gmra.mxu0 %vm365_vm2, %v453_v0  ;;  %1466 = vmatprep.subr.mxu1 %v1072_v57 }
 0x391   :  { %1467 = vmatpush3.msra.mxu1 %v1072_v57 }
 0x392   :  { %1468 = vmatprep.subr.mxu1 %v1071_v58 }
 0x393   :  { %1469 = vmatpush3.msra.mxu1 %v1071_v58 }
 0x440   :  { %v1405_v3 = vpop.f32.mrf.mxu0 }
 0x442   :  { %v544_v4 = vpop.f32.mrf.mxu0 }
 0x443   :  { %1417 = vmatprep.mubr.msk.f32.mxu0 %vm159_vm1, %v544_v4  ;;  %v1266_v4 = vld [vmem:[%s1914_s4] ss:$0 sm:$0xff] }
 0x444   :  { %1418 = vmatmul.mubr.msk.f32.vlgmr.msra.gmra.mxu0 %vm159_vm1, %v1405_v3 }
 0x445   :  { %1421 = vmatpush3.msra.mxu0 %v674_v1 }
 0x446   :  { %1425 = vmatprep.subr.mxu0 %v758_v6 }
 0x448   :  { %v1408_v7 = vpop.f32.mrf.mxu0 }
 0x44a   :  { %v554_v8 = vpop.f32.mrf.mxu0 }
 0x44b   :  { %1422 = vmatprep.mubr.msk.f32.mxu0 %vm159_vm1, %v554_v8 }
 0x44c   :  { %v1411_v10 = vpop.f32.mrf.mxu0  ;;  %1423 = vmatmul.mubr.msk.f32.vlgmr.msra.gmra.mxu0 %vm159_vm1, %v1408_v7 }
 0x44d   :  { %1426 = vmatpush3.msra.mxu0 %v758_v6 }
 0x44e   :  { %v564_v11 = vpop.f32.mrf.mxu0  ;;  %1430 = vmatprep.subr.mxu0 %v842_v9 }
 0x44f   :  { %1427 = vmatprep.mubr.msk.f32.mxu0 %vm159_vm1, %v564_v11 }
 0x450   :  { %v1414_v12 = vpop.f32.mrf.mxu0  ;;  %1428 = vmatmul.mubr.msk.f32.vlgmr.msra.gmra.mxu0 %vm159_vm1, %v1411_v10  ;;  %v1267_v10 = vld [vmem:[%s1915_s5] ss:$0 sm:$0xff] }
 0x451   :  { %1431 = vmatpush3.msra.mxu0 %v842_v9 }
 0x452   :  { %v574_v13 = vpop.f32.mrf.mxu0  ;;  %1435 = vmatprep.subr.mxu0 %v976_v43 }
 0x453   :  { %1432 = vmatprep.mubr.msk.f32.mxu0 %vm159_vm1, %v574_v13  ;;  %v1070_v13 = vld [vmem:[%s1918_s8 + $0x18] sm:$0xff] }
 0x454   :  { %1433 = vmatmul.mubr.msk.f32.vlgmr.msra.gmra.mxu0 %vm159_vm1, %v1414_v12  ;;  %1470 = vmatprep.subr.mxu1 %v1070_v13 }
 0x455   :  { %1436 = vmatpush3.msra.mxu0 %v976_v43  ;;  %1471 = vmatpush3.msra.mxu1 %v1070_v13 }
 0x456   :  { %1437 = vmatprep.subr.mxu0 %v975_v44 }
 0x457   :  { %1438 = vmatpush3.msra.mxu0 %v975_v44 }
 0x458   :  { %1439 = vmatprep.subr.mxu0 %v974_v45 }
 0x459   :  { %1440 = vmatpush3.msra.mxu0 %v974_v45 }
 0x45a   :  { %1441 = vmatprep.subr.mxu0 %v973_v46 }
 0x45b   :  { %1442 = vmatpush3.msra.mxu0 %v973_v46 }
 0x504   :  { %v1419_v14 = vpop.f32.mrf.mxu0 }
 0x505   :  { %v673_v19 = vadd.f32 %v1419_v14, %v1259_v16  ;;  %v1069_v14 = vld [vmem:[%s1918_s8 + $0x10] sm:$0xff] }
 0x506   :  { %v657_v15 = vpop.f32.mrf.mxu0  ;;  %1472 = vmatprep.subr.mxu1 %v1069_v14 }
 0x507   :  { %v672_v21 = vadd.f32 %v1259_v16, %v657_v15  ;;  %1473 = vmatpush3.msra.mxu1 %v1069_v14  ;;  %v1068_v15 = vld [vmem:[%s1918_s8 + $0x8] sm:$0xff]  ;;  %v1067_v16 = vld [vmem:[%s1918_s8] sm:$0xff] }
 0x508   :  { %1474 = vmatprep.subr.mxu1 %v1068_v15 }
 0x509   :  { %1475 = vmatpush3.msra.mxu1 %v1068_v15 }
 0x50a   :  { %1476 = vmatprep.subr.mxu1 %v1067_v16 }
 0x50b   :  { %1477 = vmatpush3.msra.mxu1 %v1067_v16 }
 0x50c   :  { %v1424_v17 = vpop.f32.mrf.mxu0 }
 0x50d   :  { %v757_v22 = vadd.f32 %v1424_v17, %v673_v19  ;;  %v1268_v17 = vld [vmem:[#allocation6] ss:$0 sm:$0xff] }
 0x50e   :  { %v747_v18 = vpop.f32.mrf.mxu0 }
 0x50f   :  { %v756_v24 = vadd.f32 %v747_v18, %v672_v21 }
 0x510   :  { %v1429_v20 = vpop.f32.mrf.mxu0 }
 0x511   :  { %v841_v25 = vadd.f32 %v1429_v20, %v757_v22 }
 0x512   :  { %v831_v23 = vpop.f32.mrf.mxu0 }
 0x513   :  { %v840_v27 = vadd.f32 %v831_v23, %v756_v24  ;;  %v1271_v24 = vld [vmem:[%s1919_s9] ss:$0 sm:$0xff] }
 0x514   :  { %v1434_v26 = vpop.f32.mrf.mxu0 }
 0x515   :  { %v925_v28 = vadd.f32 %v1434_v26, %v841_v25 }
 0x516   :  { %v915_v29 = vpop.f32.mrf.mxu0 }
 0x517   :  { %v924_v30 = vadd.f32 %v915_v29, %v840_v27  ;;  %v927_v31 = vadd.f32 %v925_v28, %v1698_v5 }
 0x519   :  { %v931_v32 = vsel %vm77_vm0, %v927_v31, 0.0  ;;  %v926_v33 = vadd.f32 %v924_v30, %v1688_v2 }
 0x51a   :  { %932 = vadd.xlane.f32.xlu0 %v931_v32 }
 0x51b   :  { %v928_v34 = vsel %vm77_vm0, %v926_v33, 0.0 }
 0x51c   :  { %929 = vadd.xlane.f32.xlu1 %v928_v34 }
 0x5a3   :  { %v933_v35 = vpop.xlane.xlu0 %932 }
 0x5a4   :  { %v936_v36 = vmul.f32 0.03125, %v933_v35 }
 0x5a5   :  { %v930_v37 = vpop.xlane.xlu1 %929 }
 0x5a6   :  { %v1809_v38 = vsub.f32 %v927_v31, %v936_v36  ;;  %v935_v39 = vmul.f32 0.03125, %v930_v37 }
 0x5a8   :  { %v1811_v40 = vsub.f32 %v926_v33, %v935_v39  ;;  %v940_v41 = vmul.f32 %v1809_v38, %v1809_v38 }
 0x5aa   :  { %v944_v5 = vsel %vm77_vm0, %v940_v41, 0.0  ;;  %v939_v2 = vmul.f32 %v1811_v40, %v1811_v40 }
 0x5ab   :  { %945 = vadd.xlane.f32.xlu0 %v944_v5 }
 0x5ac   :  { %v941_v42 = vsel %vm77_vm0, %v939_v2, 0.0 }
 0x5ad   :  { %942 = vadd.xlane.f32.xlu1 %v941_v42 }
 0x634   :  { %v946_v59 = vpop.xlane.xlu0 %945 }
 0x635   :  { %v948_v60 = vmul.f32 0.03125, %v946_v59 }
 0x636   :  { %v943_v61 = vpop.xlane.xlu1 %942 }
 0x637   :  { %v950_v62 = vadd.f32 1e-05, %v948_v60  ;;  %v947_v63 = vmul.f32 0.03125, %v943_v61 }
 0x639   :  { %1521 = vrsqrt.f32 %v950_v62  ;;  %v949_v0 = vadd.f32 1e-05, %v947_v63 }
 0x63b   :  { %1523 = vrsqrt.f32 %v949_v0 }
 0x646   :  { %v1522_v1 = vpop.eup %1521 }
 0x647   :  { %v954_v3 = vmul.f32 %v1522_v1, %v1809_v38 }
 0x648   :  { %v1524_v6 = vpop.eup %1523 }
 0x649   :  { %v953_v7 = vmul.f32 %v1524_v6, %v1811_v40  ;;  %v963_v8 = vmul.f32 %v1266_v4, %v954_v3 }
 0x64b   :  { %v962_v9 = vmul.f32 %v1266_v4, %v953_v7  ;;  %v972_v12 = vadd.f32 %v1267_v10, %v963_v8 }
 0x64d   :  { %v971_v11 = vadd.f32 %v1267_v10, %v962_v9 }
 0x64f   :  { %1443 = vmatprep.mubr.msk.f32.mxu0 %vm77_vm0, %v971_v11 }
 0x650   :  { %1444 = vmatmul.mubr.msk.f32.vlgmr.msra.gmra.mxu0 %vm77_vm0, %v972_v12 }
 0x710   :  { %v1445_v18 = vpop.f32.mrf.mxu0 }
 0x711   :  { %v1062_v19 = vadd.f32 %v1445_v18, %v1268_v17 }
 0x712   :  { %v1056_v20 = vpop.f32.mrf.mxu0 }
 0x713   :  { %v1057_v21 = vadd.f32 %v1268_v17, %v1056_v20  ;;  %v1066_v23 = vmax.f32 %v1062_v19, 0.0 }
 0x715   :  { %v1065_v22 = vmax.f32 %v1057_v21, 0.0 }
 0x717   :  { %1478 = vmatprep.mubr.f32.mxu1 %v1065_v22 }
 0x718   :  { %1479 = vmatmul.mubr.f32.vlgmr.msra.gmra.mxu1 %v1066_v23 }
 0x7d8   :  { %v1480_v25 = vpop.f32.mrf.mxu1 }
 0x7d9   :  { %v1162_v26 = vadd.f32 %v1480_v25, %v1271_v24 }
 0x7da   :  { %v1156_v27 = vpop.f32.mrf.mxu1 }
 0x7db   :  { %v1157_v28 = vadd.f32 %v1271_v24, %v1156_v27  ;;  %v1166_v29 = vadd.f32 %v1162_v26, %v972_v12 }
 0x7dd   :  { %v1170_v30 = vsel %vm77_vm0, %v1166_v29, 0.0  ;;  %v1165_v31 = vadd.f32 %v1157_v28, %v971_v11 }
 0x7de   :  { %1171 = vadd.xlane.f32.xlu0 %v1170_v30 }
 0x7df   :  { %v1167_v32 = vsel %vm77_vm0, %v1165_v31, 0.0 }
 0x7e0   :  { %1168 = vadd.xlane.f32.xlu1 %v1167_v32 }
 0x867   :  { %v1172_v33 = vpop.xlane.xlu0 %1171 }
 0x868   :  { %v1174_v34 = vmul.f32 0.03125, %v1172_v33 }
 0x869   :  { %v1169_v35 = vpop.xlane.xlu1 %1168 }
 0x86a   :  { %v1176_v36 = vsub.f32 %v1166_v29, %v1174_v34  ;;  %v1173_v37 = vmul.f32 0.03125, %v1169_v35 }
 0x86c   :  { %v1175_v38 = vsub.f32 %v1165_v31, %v1173_v37  ;;  %v1178_v39 = vmul.f32 %v1176_v36, %v1176_v36 }
 0x86e   :  { %v1182_v40 = vsel %vm77_vm0, %v1178_v39, 0.0  ;;  %v1177_v41 = vmul.f32 %v1175_v38, %v1175_v38 }
 0x86f   :  { %1183 = vadd.xlane.f32.xlu0 %v1182_v40 }
 0x870   :  { %v1179_v5 = vsel %vm77_vm0, %v1177_v41, 0.0 }
 0x871   :  { %1180 = vadd.xlane.f32.xlu1 %v1179_v5 }
 0x8f8   :  { %v1184_v2 = vpop.xlane.xlu0 %1183 }
 0x8f9   :  { %v1186_v42 = vmul.f32 0.03125, %v1184_v2 }
 0x8fa   :  { %v1181_v43 = vpop.xlane.xlu1 %1180 }
 0x8fb   :  { %v1188_v44 = vadd.f32 1e-05, %v1186_v42  ;;  %v1185_v45 = vmul.f32 0.03125, %v1181_v43 }
 0x8fd   :  { %1525 = vrsqrt.f32 %v1188_v44  ;;  %v1187_v46 = vadd.f32 1e-05, %v1185_v45 }
 0x8ff   :  { %1527 = vrsqrt.f32 %v1187_v46 }
 0x90a   :  { %v1526_v47 = vpop.eup %1525 }
 0x90b   :  { %v1192_v49 = vmul.f32 %v1526_v47, %v1176_v36 }
 0x90c   :  { %v1528_v50 = vpop.eup %1527 }
 0x90d   :  { %v1191_v52 = vmul.f32 %v1528_v50, %v1175_v38  ;;  %v1201_v53 = vmul.f32 %v1272_v48, %v1192_v49 }
 0x90f   :  { %v1200_v54 = vmul.f32 %v1272_v48, %v1191_v52  ;;  %v1210_v55 = vadd.f32 %v1273_v51, %v1201_v53 }
 0x911   :  { %v1209_v56 = vadd.f32 %v1273_v51, %v1200_v54  ;;  %1212 = vst.msk [vmem:[#allocation8 + $0x8] sm:$0xff] %vm77_vm0, %v1210_v55 }
 0x913   :  { %1211 = vst.msk [vmem:[#allocation8] sm:$0xff] %vm77_vm0, %v1209_v56 }
 0x914   :  { %1580 = shalt.err (!%p1577_p0)
}
 0x915   :  { %1224 = dma.vmem_to_hbm [thread:$0]  %s1219_s21, 256, %s1923_s13, [#allocation5], %s1596_s28, %s1596_s28, %s1597_s29  }
 0x916   :  { %1593 = dma.done.wait [#allocation5], 256  }
 0x917   :  { %1594 = vsyncadd [#allocation5], 4294967040 }
 0x918   :  { %1228 = vsyncpa [#allocation4], 1 }
 0x919   :  { %1229 = vsyncpa [#allocation7], 1 }
 0x91a   :  { %1230 = vsyncpa [#allocation5], 1 }

</bundles_post_ra>
